<compile_context>
chip_gen: v5e
topology: v5e:2x2
jax: 0.10.0
libtpu: 0.0.40
codegen_flags: <defaults>
</compile_context>

<pallas_src>
import jax
import jax.numpy as jnp
from jax.experimental import pallas as pl
from jax.experimental.pallas import tpu as pltpu


def _copy_kernel(x_ref, o_ref):
    # 1:1 tile copy; the chomp lives purely in BlockSpec indexing.
    o_ref[...] = x_ref[...]


def _round_up(x: int, m: int) -> int:
    return (x + m - 1) // m * m


def chomp1d(x: jax.Array, chomp_size: int) -> jax.Array:
    """Pallas TPU equivalent of torch Chomp1d(chomp_size)(x), x of shape (B, C, L)."""
    assert x.ndim == 3, "expected (B, C, L) input"
    B, C, L = x.shape
    # NOTE: torch's x[:, :, :-0] is degenerate (empty), so we require > 0.
    assert 0 < chomp_size < L, "chomp_size must be in (0, L)"
    L_out = L - chomp_size

    # Tiny-length path: lane width < 128 would force masked vst.msk stores and
    # the fixed pallas_call overhead has nothing to hide behind — a plain XLA
    # slice is strictly faster on every TPU generation and can fuse downstream.
    if L_out < 128:
        return x[:, :, :L_out]

    # Flatten batch*channels into one row dimension (free reshape).
    BC = B * C
    x2 = x.reshape(BC, L)
    itemsize = jnp.dtype(x.dtype).itemsize

    # Lane tile: multiple of 128, capped at 2048 (~1-2 MiB f32 blocks) so the
    # per-step overhead is amortized and per-row contiguous DMA runs are long.
    T = min(2048, (L_out // 128) * 128)
    n_col = pl.cdiv(L_out, T)

    # Row tile: balanced blocks, multiple of 8 (or the full row extent, which
    # is always a legal block dim). Guarantee >= 2 grid blocks along some
    # "parallel" axis when BC is big enough, so v7x's 2 TCs both get work.
    if BC <= 256:
        if n_col >= 2 or BC < 16:
            R = BC
        else:
            R = _round_up(pl.cdiv(BC, 2), 8)
    else:
        R = _round_up(pl.cdiv(BC, pl.cdiv(BC, 256)), 8)
    n_row = pl.cdiv(BC, R)

    block_bytes = R * T * itemsize
    # Double-buffered input + output blocks, plus headroom. Stays well under
    # the 16 MiB (v5e) / 32 MiB (v6e, v7x) scoped-VMEM defaults.
    vmem_limit = 4 * block_bytes + (4 << 20)

    cost = pl.CostEstimate(
        flops=0,
        transcendentals=0,
        bytes_accessed=2 * BC * L_out * itemsize,
    )

    out2 = pl.pallas_call(
        _copy_kernel,
        out_shape=jax.ShapeDtypeStruct((BC, L_out), x.dtype),
        grid_spec=pltpu.PrefetchScalarGridSpec(
            num_scalar_prefetch=0,
            grid=(n_row, n_col),
            in_specs=[pl.BlockSpec((R, T), lambda i, j: (i, j))],
            out_specs=pl.BlockSpec((R, T), lambda i, j: (i, j)),
        ),
        compiler_params=pltpu.CompilerParams(
            dimension_semantics=("parallel", "parallel"),
            vmem_limit_bytes=vmem_limit,
        ),
        cost_estimate=cost,
    )(x2)

    return out2.reshape(B, C, L_out)


if __name__ == "__main__":
    key = jax.random.PRNGKey(0)

    # Small shape consistent with the module's (B, C, L) conv1d layout.
    # (L_out < 128, exercises the XLA-slice fast path.)
    B, C, L = 2, 4, 16
    chomp_size = 3  # Chomp1d has no weights; chomp_size is its only parameter.
    x = jax.random.normal(key, (B, C, L), dtype=jnp.float32)

    out = jax.block_until_ready(chomp1d(x, chomp_size))
    ref = x[:, :, :-chomp_size]
    assert out.shape == (B, C, L - chomp_size), out.shape
    assert out.dtype == x.dtype
    assert jnp.array_equal(out, ref), "mismatch vs reference slice (small path)"

    # Tiled Pallas path (L_out >= 128), ragged final column block included.
    B2, C2, L2, chomp2 = 2, 8, 384, 5
    x_big = jax.random.normal(jax.random.PRNGKey(0), (B2, C2, L2), dtype=jnp.float32)
    out_big = jax.block_until_ready(chomp1d(x_big, chomp2))
    assert out_big.shape == (B2, C2, L2 - chomp2), out_big.shape
    assert jnp.array_equal(out_big, x_big[:, :, :-chomp2]), "mismatch (tiled path)"

    print("KERNEL_OK")
</pallas_src>

<mosaic_0001>
module attributes {stable_mosaic.version = 11 : i64} {
  func.func @_copy_kernel(%arg0: i32, %arg1: i32, %arg2: memref<16x256xf32, #tpu.memory_space<vmem>>, %arg3: memref<16x256xf32, #tpu.memory_space<vmem>>) attributes {dimension_semantics = [#tpu.dimension_semantics<parallel>, #tpu.dimension_semantics<parallel>], iteration_bounds = array<i64: 1, 2>, scalar_prefetch = 0 : i64, scratch_operands = 0 : i64, tpu.core_type = #tpu.core_type<tc>, window_params = [{transform_indices = @transform_0, window_bounds = array<i64: 16, 256>}, {transform_indices = @transform_1, window_bounds = array<i64: 16, 256>}]} {
    %c0 = arith.constant 0 : index
    %c0_0 = arith.constant 0 : index
    %0 = vector.load %arg2[%c0, %c0_0] : memref<16x256xf32, #tpu.memory_space<vmem>>, vector<16x256xf32>
    %c0_1 = arith.constant 0 : index
    %c0_2 = arith.constant 0 : index
    %1 = vector.load %arg3[%c0_1, %c0_2] : memref<16x256xf32, #tpu.memory_space<vmem>>, vector<16x256xf32>
    tpu.vector_store %arg3[%c0_1, %c0_2], %0 {strides = array<i32>} : memref<16x256xf32, #tpu.memory_space<vmem>>, vector<16x256xf32>,
    return
  }
  func.func @transform_0(%arg0: i32, %arg1: i32) -> (i32, i32) {
    %c0_i32 = arith.constant 0 : i32
    return %arg0, %arg1 : i32, i32
  }
  func.func @transform_1(%arg0: i32, %arg1: i32) -> (i32, i32) {
    %c0_i32 = arith.constant 0 : i32
    return %arg0, %arg1 : i32, i32
  }
}

</mosaic_0001>

<bundles_post_ra>
// kernel: tpu_custom_call.1
= control target key start
LH: loop header
LB: loop body
LE: loop exit
PB: predicated region body
PF: predicated region fallthrough
CT: control target
= control target key end

     0   :  { %6 = vsyncpa [#allocation3], 0  ;;  %s725_s0 = inlined_call_operand.hbm [shape: f32[16,384], index: 0, kind: input, shape index: {}]   ;;  %s726_s1 = inlined_call_operand.hbm [shape: f32[16,379], index: 1, kind: output, shape index: {}]  }
   0x1   :  { %8 = vsyncpa [#allocation3 + $0x1], 0 }
   0x2   :  { %9 = vsyncpa [#allocation4], 0 }
   0x3   :  { %11 = vsyncpa [#allocation4 + $0x1], 0  ;;  %s538_s6 = smov 0   ;;  %s540_s7 = smov 0  }
   0x4   :  { %s542_s8 = smov 0   ;;  %s544_s9 = smov 0  }
   0x5   :  { %s546_s10 = smov 0   ;;  %s548_s11 = smov 0  }
   0x6 LB: > { %s298_s12 = sadd.s32 4294967295, %s520_s11   ;;  %s299_s13 = sadd.s32 4294967294, %s520_s11   ;;  %s520_s11 = sphi %s548_s11, %s17_s11   ;;  %s516_s10 = sphi %s546_s10, %s736_s10   ;;  %s512_s9 = sphi %s544_s9, %s735_s9   ;;  %s508_s8 = sphi %s542_s8, %s734_s8   ;;  %s504_s7 = sphi %s540_s7, %s733_s7   ;;  %s500_s6 = sphi %s538_s6, %s732_s6  }
   0x7   : > { %s26_s14 = sadd.s32 1, %s516_s10  ;;  %s38_s15 = sadd.s32 1, %s508_s8 }
   0x8   : > { %p27_p0 = scmp.ge.s32.totalorder %s26_s14, 2  ;;  %p45_p1 = scmp.ne.s32.totalorder %s508_s8, %s504_s7 }
   0x9   : > { %p46_p2 = scmp.eq.s32.totalorder %s520_s11, 0  ;;  %p51_p3 = scmp.ne.s32.totalorder %s504_s7, %s500_s6 }
   0xa   : > { %s738_s14 = smov (%p27_p0, %s26_s14), 0  ;;  %p52_p5 = scmp.eq.s32.totalorder %s298_s12, 0 }
   0xb   : > { %p47_p4 = por %p46_p2, %p45_p1  ;;  %s34_s16 = ssub.s32 %s516_s10, %s738_s14 }
   0xc   : > { %p77_p6 = scmp.eq.s32.totalorder %s298_s12, 1  ;;  %p36_p7 = scmp.eq.s32.totalorder %s34_s16, 0 }
   0xd   : > { %p581_p8 = por %p52_p5, %p51_p3  ;;  %p83_p10 = scmp.eq.s32.totalorder %s299_s13, 1 }
   0xe   : > { %p585_p9 = por %p77_p6, %p45_p1  ;;  %p301_p12 = scmp.ge.s32.totalorder %s520_s11, 2 }
   0xf   : > { %s590_s19 = scalar_select %p36_p7, %s508_s8, %s38_s15  }
  0x10   : > { %p592_p11 = por %p83_p10, %p51_p3  ;;  %99 = sbr.rel (%p301_p12) target bundleno = 58 (0x3a), region = 16 }
  0x15   : > { %102 = sbr.rel (!%p47_p4) target bundleno = 58 (0x3a), region = 20  ;;  %s103_s21 = sand.u32 (%p47_p4), 1, %s508_s8  }
  0x16   : > { %s303_s22 = sshll.u32 (%p47_p4), %s516_s10, 1  ;;  %s302_s23 = sshll.u32 (%p47_p4), %s103_s21, 5 }
  0x17   : > { %s110_s24 = ssub.s32 (%p47_p4), 3, %s303_s22  ;;  %s604_s28 = scalar_lea.sflag (%p47_p4), [#allocation3], %s103_s21 }
  0x18   : > { %p111_p13 = scmp.lt.s32.totalorder (%p47_p4), %s110_s24, 2  ;;  %s107_s29 = scalar_lea.vmem (%p47_p4), [#allocation2], %s302_s23 }
  0x1a   : > { %s740_s24 = smov (!%p111_p13, %s110_s24), 2 }
  0x1b   : > { %s304_s25 = sshll.u32 %s740_s24, 4 }
  0x1c   : > { %s114_s26 = ssub.s32 32, %s304_s25 }
  0x1d   : > { %s115_s27 = sshll.u32 %s114_s26, 4 }
  0x1e   : > { %116 = vsyncadd %s604_s28, %s115_s27  ;;  %p607_p0 = scmp.ne.s32.totalorder %s304_s25, 0  ;;  %s323_s2 = sshll.u32 %s516_s10, 4 }
  0x1f   : > { %s121_s5 = scalar_lea.hbm %s725_s0, %s323_s2  ;;  %s307_s12 = sshll.u32 %s740_s24, 3 }
  0x20   : > { %s124_s13 = sshll.u32 %s121_s5, 4  ;;  %s616_s15 = sshll.u32 %s107_s29, 4  ;;  %s618_s13 = int_to_ptr.hbm [resolvable:$true] %s124_s13  ;;  %s127_s15 = int_to_ptr.vmem [resolvable:$true] %s616_s15 }
  0x21   : > { %s325_s16 = sshll.u32 %s740_s24, 8  ;;  %s388_s21 = sshra.s32 %s618_s13, 4  ;;  %s389_s21 = int_to_ptr.hbm [resolvable:$true] %s388_s21 }
  0x22   : > { %s390_s22 = sshrl.u32 %s325_s16, 4  ;;  %s399_s27 = scalar_lea.hbm %s725_s0, 48 }
  0x23   : > { %s395_s23 = scalar_lea.hbm %s389_s21, %s390_s22 }
  0x24   : > { %p396_p1 = scmp.ne.s32.totalorder %s389_s21, %s395_s23  ;;  %p401_p4 = scmp.lt.s32.totalorder %s399_s27, %s395_s23 }
  0x26   : > { %p397_p2 = pnand %p396_p1, %p607_p0 }
  0x28   : > { %p398_p3 = pneg %p397_p2 }
  0x2a   : > { %p403_p5 = pnand %p401_p4, %p398_p3 }
  0x2c   : > { %406 = shalt.err (!%p403_p5)
}
  0x2d   : > { %s407_s29 = sshra.s32 %s127_s15, 4  ;;  %s522_s3 = smov [#allocation2]   ;;  %s408_s29 = int_to_ptr.vmem [resolvable:$true] %s407_s29 }
  0x2e   : > { %s414_s2 = scalar_lea.vmem %s408_s29, %s390_s22  ;;  %s418_s4 = scalar_lea.vmem %s522_s3, 64 }
  0x2f   : > { %p415_p6 = scmp.ne.s32.totalorder %s408_s29, %s414_s2  ;;  %p420_p13 = scmp.lt.s32.totalorder %s418_s4, %s414_s2 }
  0x31   : > { %p416_p7 = pnand %p415_p6, %p607_p0 }
  0x33   : > { %p417_p10 = pneg %p416_p7 }
  0x35   : > { %p422_p1 = pnand %p420_p13, %p417_p10 }
  0x37   : > { %425 = shalt.err (!%p422_p1)
}
  0x38   : > { %s523_s5 = smov 384   ;;  %s524_s21 = smov 256  }
  0x39   : > { %132 = dma.hbm_to_vmem [thread:$0]  (%p607_p0), %s618_s13, %s325_s16, %s127_s15, %s604_s28, %s523_s5, %s524_s21, %s307_s12  }
  0x3a PF: > { %p310_p2 = scmp.ge.s32.totalorder %s520_s11, 1  ;;  %p134_p3 = scmp.lt.s32.totalorder %s520_s11, 3 }
  0x3c   : > { %p135_p4 = pnand %p310_p2, %p134_p3 }
  0x3d   : > { %s647_s22 = sand.u32 (!%p135_p4), 1, %s504_s7  }
  0x3e   : > { %138 = sbr.rel (%p135_p4) target bundleno = 106 (0x6a), region = 24  ;;  %s311_s23 = sshll.u32 (!%p135_p4), %s647_s22, 5 }
  0x3f   : > { %s141_s30 = scalar_lea.sflag (!%p135_p4), [#allocation3], %s647_s22  ;;  %s144_s25 = scalar_lea.vmem (!%p135_p4), [#allocation2], %s311_s23 }
  0x43   : > { %491 = dma.done.wait (%p581_p8), %s141_s30, 512  }
  0x44   : > { %493 = vsyncadd (%p581_p8), %s141_s30, 4294966784  ;;  %v176_v0 = vld [vmem:[%s144_s25] sm:$0xff]  ;;  %v177_v1 = vld [vmem:[%s144_s25 + $0x8] sm:$0xff]  ;;  %s163_s24 = scalar_lea.vmem [#allocation5], %s311_s23  ;;  %s185_s28 = scalar_lea.sflag [#allocation4], %s647_s22 }
  0x45   : > { %v178_v2 = vld [vmem:[%s144_s25 + $0x10] sm:$0xff]  ;;  %180 = vst [vmem:[%s163_s24] sm:$0xff] %v176_v0  ;;  %v179_v3 = vld [vmem:[%s144_s25 + $0x18] sm:$0xff]  ;;  %191 = sbr.rel (!%p585_p9) target bundleno = 106 (0x6a), region = 32  ;;  %s314_s12 = sshll.u32 (%p585_p9), %s512_s9, 1 }
  0x46   : > { %181 = vst [vmem:[%s163_s24 + $0x8] sm:$0xff] %v177_v1  ;;  %s194_s13 = ssub.s32 (%p585_p9), 3, %s314_s12 }
  0x47   : > { %182 = vst [vmem:[%s163_s24 + $0x10] sm:$0xff] %v178_v2  ;;  %p195_p0 = scmp.lt.s32.totalorder (%p585_p9), %s194_s13, 2 }
  0x48   : > { %183 = vst [vmem:[%s163_s24 + $0x18] sm:$0xff] %v179_v3 }
  0x4a   : > { %s742_s13 = smov (!%p195_p0, %s194_s13), 2 }
  0x4b   : > { %s315_s17 = sshll.u32 %s742_s13, 4 }
  0x4c   : > { %s198_s15 = ssub.s32 32, %s315_s17 }
  0x4d   : > { %s199_s16 = sshll.u32 %s198_s15, 4 }
  0x4e   : > { %200 = vsyncadd %s185_s28, %s199_s16  ;;  %p664_p8 = scmp.ne.s32.totalorder %s315_s17, 0  ;;  %s326_s26 = sshll.u32 %s512_s9, 4 }
  0x4f   : > { %s205_s2 = scalar_lea.hbm %s726_s1, %s326_s26  ;;  %s318_s3 = sshll.u32 %s742_s13, 3 }
  0x50   : > { %s208_s4 = sshll.u32 %s163_s24, 4  ;;  %s210_s5 = sshll.u32 %s205_s2, 4  ;;  %s673_s4 = int_to_ptr.vmem [resolvable:$true] %s208_s4  ;;  %s675_s5 = int_to_ptr.hbm [resolvable:$true] %s210_s5 }
  0x51   : > { %s328_s21 = sshll.u32 %s742_s13, 8  ;;  %s427_s23 = sshra.s32 %s673_s4, 4  ;;  %s428_s23 = int_to_ptr.vmem [resolvable:$true] %s427_s23 }
  0x52   : > { %s429_s30 = sshrl.u32 %s328_s21, 4  ;;  %s525_s9 = smov [#allocation5]  }
  0x53   : > { %s434_s25 = scalar_lea.vmem %s428_s23, %s429_s30  ;;  %s438_s12 = scalar_lea.vmem %s525_s9, 64 }
  0x54   : > { %p435_p9 = scmp.ne.s32.totalorder %s428_s23, %s434_s25  ;;  %p440_p7 = scmp.lt.s32.totalorder %s438_s12, %s434_s25 }
  0x56   : > { %p436_p5 = pnand %p435_p9, %p664_p8 }
  0x58   : > { %p437_p6 = pneg %p436_p5 }
  0x5a   : > { %p442_p10 = pnand %p440_p7, %p437_p6 }
  0x5c   : > { %445 = shalt.err (!%p442_p10)
}
  0x5d   : > { %s446_s24 = sshra.s32 %s675_s5, 4  ;;  %s457_s26 = scalar_lea.hbm %s726_s1, 48  ;;  %s447_s24 = int_to_ptr.hbm [resolvable:$true] %s446_s24 }
  0x5e   : > { %s453_s17 = scalar_lea.hbm %s447_s24, %s429_s30  ;;  %p458_p3 = scmp.lt.s32.totalorder %s447_s24, %s726_s1 }
  0x5f   : > { %p454_p13 = scmp.ne.s32.totalorder %s447_s24, %s453_s17  ;;  %p459_p4 = scmp.lt.s32.totalorder %s457_s26, %s453_s17 }
  0x61   : > { %p455_p1 = pnand %p454_p13, %p664_p8  ;;  %p460_p0 = por %p459_p4, %p458_p3 }
  0x63   : > { %p456_p2 = pneg %p455_p1 }
  0x65   : > { %p461_p9 = pnand %p460_p0, %p456_p2 }
  0x67   : > { %464 = shalt.err (!%p461_p9)
}
  0x68   : > { %s526_s2 = smov 256   ;;  %s527_s23 = smov 384  }
  0x69   : > { %216 = dma.vmem_to_hbm [thread:$0]  (%p664_p8), %s673_s4, %s328_s21, %s675_s5, %s185_s28, %s526_s2, %s527_s23, %s318_s3  }
  0x6a PF: > { %s225_s30 = sand.u32 1, %s500_s6   ;;  %p332_p5 = pnand %p301_p12, %p592_p11 }
  0x6b   : > { %s226_s25 = scalar_lea.sflag [#allocation4], %s225_s30 }
  0x6c   : > { %p333_p6 = pneg %p332_p5 }
  0x6e   : > { %495 = dma.done.wait (%p333_p6), %s226_s25, 512  }
  0x6f   : > { %497 = vsyncadd (%p333_p6), %s226_s25, 4294966784  ;;  %s17_s11 = sadd.s32 1, %s520_s11   ;;  %s732_s6 = smov %s504_s7 }
  0x70   : > { %p14_p7 = scmp.ge.s32.totalorder %s17_s11, 4   ;;  %s733_s7 = smov %s508_s8 }
  0x71   : > { %s734_s8 = smov %s590_s19  ;;  %s735_s9 = smov %s516_s10 }
  0x72   : > { %s736_s10 = smov %s738_s14  ;;  %16 = sbr.rel (!%p14_p7) target bundleno = 6 (0x6), region = 69 }
  0x77   :  { %232 = vsyncpa [#allocation3], 1 }
  0x78   :  { %234 = vsyncpa [#allocation3 + $0x1], 1 }
  0x79   :  { %235 = vsyncpa [#allocation4], 1 }
  0x7a   :  { %237 = vsyncpa [#allocation4 + $0x1], 1 }

</bundles_post_ra>
